<compile_context>
chip_gen: v5e
topology: v5e:2x2
jax: 0.10.0
libtpu: 0.0.40
codegen_flags: <defaults>
</compile_context>

<pallas_src>
import functools
import math

import jax
import jax.numpy as jnp
from jax import lax
from jax.experimental import pallas as pl
from jax.experimental.pallas import tpu as pltpu

_MIB = 1024 * 1024


# ----------------------------- helpers ---------------------------------------


def _round_up(x, m):
    return ((x + m - 1) // m) * m


def _sublane_align(dtype):
    """Minimum sublane tile for a dtype: 8 (f32), 16 (bf16/f16), 32 (8-bit)."""
    itemsize = jnp.dtype(dtype).itemsize
    if itemsize >= 4:
        return 8
    if itemsize == 2:
        return 16
    return 32


def _choose_tile(dim, candidates, align):
    """Largest candidate tile whose zero-padding waste is modest."""
    padded_min = _round_up(dim, align)
    threshold = max(dim // 8, align)
    for c in candidates:
        if c <= padded_min and (_round_up(dim, c) - dim) <= threshold:
            return c
    return align


@functools.lru_cache(maxsize=1)
def _vmem_budgets():
    """(tile working-set budget, vmem_limit cap) per TPU generation."""
    cap = 0
    try:
        info = pltpu.get_tpu_info()
        cap = int(getattr(info, "vmem_capacity_bytes", 0) or 0)
    except Exception:
        cap = 0
    if cap >= 96 * _MIB:
        # v5e / v6e: 128 MiB physical VMEM -> allow much larger resident tiles.
        return 56 * _MIB, 100 * _MIB
    # v7x (64 MiB) or unknown generation: stay conservative, leave Mosaic
    # internal-scratch headroom.
    return 24 * _MIB, 48 * _MIB


def _vmem_est(tm, tn, tk, x_bytes, w_bytes, o_bytes, with_scratch):
    # Pallas double-buffers every input/output tile; f32 accumulator optional.
    est = 2 * (tm * tk * x_bytes + tn * tk * w_bytes + tm * tn * o_bytes)
    if with_scratch:
        est += tm * tn * 4
    return est


# ----------------------------- kernels ----------------------------------------


def _make_linear_kernel(has_bias, accumulate_in_output):
    """Build a (tm, tn) output-tile kernel; K reduction is the trailing grid axis.

    x_ref: (tm, tk), w_ref: (tn, tk) -> contract last dims (x @ w.T, no transpose).
    """

    def _partial(x_ref, w_ref):
        return lax.dot_general(
            x_ref[...],
            w_ref[...],
            dimension_numbers=(((1,), (1,)), ((), ())),
            preferred_element_type=jnp.float32,
        )

    if accumulate_in_output:
        # Output dtype is f32: accumulate directly into the resident output
        # block; no scratch accumulator, no epilogue copy.
        if has_bias:

            def kernel(x_ref, w_ref, b_ref, o_ref):
                @pl.when(pl.program_id(2) == 0)
                def _():
                    o_ref[...] = jnp.broadcast_to(
                        b_ref[...].astype(o_ref.dtype), o_ref.shape
                    )

                o_ref[...] += _partial(x_ref, w_ref)

        else:

            def kernel(x_ref, w_ref, o_ref):
                @pl.when(pl.program_id(2) == 0)
                def _():
                    o_ref[...] = jnp.zeros_like(o_ref)

                o_ref[...] += _partial(x_ref, w_ref)

    else:
        # Narrow output dtype: accumulate in an f32 VMEM scratch, cast once.
        if has_bias:

            def kernel(x_ref, w_ref, b_ref, o_ref, acc_ref):
                k = pl.program_id(2)

                @pl.when(k == 0)
                def _():
                    acc_ref[...] = jnp.broadcast_to(
                        b_ref[...].astype(jnp.float32), acc_ref.shape
                    )

                acc_ref[...] += _partial(x_ref, w_ref)

                @pl.when(k == pl.num_programs(2) - 1)
                def _():
                    o_ref[...] = acc_ref[...].astype(o_ref.dtype)

        else:

            def kernel(x_ref, w_ref, o_ref, acc_ref):
                k = pl.program_id(2)

                @pl.when(k == 0)
                def _():
                    acc_ref[...] = jnp.zeros_like(acc_ref)

                acc_ref[...] += _partial(x_ref, w_ref)

                @pl.when(k == pl.num_programs(2) - 1)
                def _():
                    o_ref[...] = acc_ref[...].astype(o_ref.dtype)

    return kernel


# ----------------------------- forward ----------------------------------------


@functools.partial(
    jax.jit, static_argnames=("n_out", "k_in", "tn", "tk", "budget", "limit_cap")
)
def _linear_forward(x, w_pad, b_pad, *, n_out, k_in, tn, tk, budget, limit_cap):
    """x: (..., k_in); w_pad: (Np, Kp) pre-padded weight; b_pad: (1, Np) or None."""
    *lead, K = x.shape
    assert K == k_in, "in_features mismatch"
    Np, Kp = w_pad.shape

    M = math.prod(lead) if lead else 1
    x2d = x.reshape(M, K)

    x_bytes = jnp.dtype(x.dtype).itemsize
    w_bytes = jnp.dtype(w_pad.dtype).itemsize
    out_dtype = x.dtype
    o_bytes = jnp.dtype(out_dtype).itemsize
    accumulate_in_output = out_dtype == jnp.float32
    has_bias = b_pad is not None

    # --- choose tm (tn/tk were fixed when the weight was padded) -------------
    align = _sublane_align(x.dtype)
    tm_cands = tuple(c for c in (512, 256, 128, 64, 32, 16, 8) if c >= align)
    tm = _choose_tile(M, tm_cands, align)
    while (
        _vmem_est(tm, tn, tk, x_bytes, w_bytes, o_bytes, not accumulate_in_output)
        > budget
        and tm > align
    ):
        tm = max(align, tm // 2)

    Mp = _round_up(M, tm)

    # Ensure >=2 blocks along a "parallel" grid axis so both v7x TensorCores
    # get work. Smaller power-of-two tiles still divide the padded extents.
    if (Mp // tm) * (Np // tn) < 2:
        if tn > 128:
            tn //= 2
        elif tm > align and Mp // (tm // 2) >= 2:
            tm //= 2
            Mp = _round_up(M, tm)

    # Pad activations only (weight/bias were padded once at prep time).
    if (Mp, Kp) != (M, K):
        x2d = jnp.pad(x2d, ((0, Mp - M), (0, Kp - K)))

    grid = (Mp // tm, Np // tn, Kp // tk)

    vmem_est = _vmem_est(
        tm, tn, tk, x_bytes, w_bytes, o_bytes, not accumulate_in_output
    )
    compiler_params = pltpu.CompilerParams(
        dimension_semantics=("parallel", "parallel", "arbitrary"),
        vmem_limit_bytes=int(min(limit_cap, max(32 * _MIB, 2 * vmem_est))),
    )
    # Actual tiled HBM traffic: x re-read Np/tn times, weight re-read Mp/tm times.
    cost = pl.CostEstimate(
        flops=2 * M * n_out * K,
        transcendentals=0,
        bytes_accessed=int(
            (Np // tn) * Mp * Kp * x_bytes
            + (Mp // tm) * Np * Kp * w_bytes
            + Mp * Np * o_bytes
        ),
    )

    x_spec = pl.BlockSpec((tm, tk), lambda i, j, k: (i, k))
    w_spec = pl.BlockSpec((tn, tk), lambda i, j, k: (j, k))
    o_spec = pl.BlockSpec((tm, tn), lambda i, j, k: (i, j))
    scratch = [] if accumulate_in_output else [pltpu.VMEM((tm, tn), jnp.float32)]
    out_shape = jax.ShapeDtypeStruct((Mp, Np), out_dtype)

    kernel = _make_linear_kernel(has_bias, accumulate_in_output)

    if has_bias:
        in_specs = [x_spec, w_spec, pl.BlockSpec((1, tn), lambda i, j, k: (0, j))]
        operands = (x2d, w_pad, b_pad)
    else:
        in_specs = [x_spec, w_spec]
        operands = (x2d, w_pad)

    out2d = pl.pallas_call(
        kernel,
        out_shape=out_shape,
        grid_spec=pltpu.PrefetchScalarGridSpec(
            num_scalar_prefetch=0,
            grid=grid,
            in_specs=in_specs,
            out_specs=o_spec,
            scratch_shapes=scratch,
        ),
        compiler_params=compiler_params,
        cost_estimate=cost,
    )(*operands)

    out2d = out2d[:M, :n_out]
    return out2d.reshape(*lead, n_out)


# ----------------------------- module wrapper ---------------------------------


class PallasLinearLayer:
    """Single-worker LinearLayer.forward. Weight padding/layout done ONCE here."""

    def __init__(self, weight, bias=None):
        N, K = weight.shape
        self.out_features, self.in_features = N, K
        budget, limit_cap = _vmem_budgets()
        self._budget, self._limit_cap = budget, limit_cap

        w_bytes = jnp.dtype(weight.dtype).itemsize

        tn = _choose_tile(N, (512, 256, 128), 128)
        tk = _choose_tile(K, (2048, 1024, 512, 256, 128), 128)
        # Defensive shrink assuming the largest plausible tm (512).
        while _vmem_est(512, tn, tk, w_bytes, w_bytes, w_bytes, True) > budget and tk > 128:
            tk //= 2
        while _vmem_est(512, tn, tk, w_bytes, w_bytes, w_bytes, True) > budget and tn > 128:
            tn //= 2
        self.tn, self.tk = tn, tk

        Np, Kp = _round_up(N, tn), _round_up(K, tk)
        w_pad = weight
        if (Np, Kp) != (N, K):
            w_pad = jnp.pad(weight, ((0, Np - N), (0, Kp - K)))
        self.weight = w_pad

        if bias is not None:
            b2d = bias.reshape(1, N)
            if Np != N:
                b2d = jnp.pad(b2d, ((0, 0), (0, Np - N)))
            self.bias = b2d
        else:
            self.bias = None

    def __call__(self, x):
        return _linear_forward(
            x,
            self.weight,
            self.bias,
            n_out=self.out_features,
            k_in=self.in_features,
            tn=self.tn,
            tk=self.tk,
            budget=self._budget,
            limit_cap=self._limit_cap,
        )


def linear_layer_forward(x, weight, bias=None):
    """One-shot functional form (pads weight per call; prefer PallasLinearLayer)."""
    return PallasLinearLayer(weight, bias)(x)


# ------------------------------- test ------------------------------------------

if __name__ == "__main__":
    key = jax.random.PRNGKey(0)
    kx, kw, kb, kx2, kw2, kx3, kw3, kb3 = jax.random.split(key, 8)

    # Case 1: aligned f32 shapes (batch=2, seq=8, in=128, out=256) with bias.
    batch, seq, in_features, out_features = 2, 8, 128, 256
    x = jax.random.normal(kx, (batch, seq, in_features), dtype=jnp.float32)
    weight = jax.random.normal(kw, (out_features, in_features), dtype=jnp.float32) * 0.02
    bias = jax.random.normal(kb, (out_features,), dtype=jnp.float32) * 0.02

    layer = PallasLinearLayer(weight, bias)
    out = jax.block_until_ready(layer(x))
    ref = jnp.matmul(x, weight.T) + bias
    assert out.shape == (batch, seq, out_features)
    assert jnp.allclose(out, ref, atol=1e-4, rtol=1e-4), "mismatch vs reference (bias)"

    # Case 2: unaligned f32 shapes, no bias (exercises padding + no-bias kernel).
    b2, s2, k2, n2 = 2, 7, 96, 200
    x2 = jax.random.normal(kx2, (b2, s2, k2), dtype=jnp.float32)
    w2 = jax.random.normal(kw2, (n2, k2), dtype=jnp.float32) * 0.02
    out2 = jax.block_until_ready(linear_layer_forward(x2, w2, None))
    ref2 = jnp.matmul(x2, w2.T)
    assert out2.shape == (b2, s2, n2)
    assert jnp.allclose(out2, ref2, atol=1e-4, rtol=1e-4), "mismatch vs reference (no bias)"

    # Case 3: bf16 path (scratch f32 accumulator + 16-sublane alignment) with bias.
    b3, s3, k3, n3 = 2, 8, 128, 128
    x3 = jax.random.normal(kx3, (b3, s3, k3), dtype=jnp.float32).astype(jnp.bfloat16)
    w3 = (jax.random.normal(kw3, (n3, k3), dtype=jnp.float32) * 0.02).astype(jnp.bfloat16)
    b3v = (jax.random.normal(kb3, (n3,), dtype=jnp.float32) * 0.02).astype(jnp.bfloat16)
    out3 = jax.block_until_ready(PallasLinearLayer(w3, b3v)(x3))
    ref3 = (
        jnp.matmul(x3.astype(jnp.float32), w3.astype(jnp.float32).T)
        + b3v.astype(jnp.float32)
    )
    assert out3.shape == (b3, s3, n3)
    assert jnp.allclose(out3.astype(jnp.float32), ref3, atol=5e-2, rtol=5e-2), (
        "mismatch vs reference (bf16)"
    )

    print("KERNEL_OK")
</pallas_src>

<mosaic_0001>
module attributes {stable_mosaic.version = 11 : i64} {
  func.func @kernel(%arg0: i32, %arg1: i32, %arg2: i32, %arg3: memref<16x128xf32, #tpu.memory_space<vmem>>, %arg4: memref<128x128xf32, #tpu.memory_space<vmem>>, %arg5: memref<1x128xf32, #tpu.memory_space<vmem>>, %arg6: memref<16x128xf32, #tpu.memory_space<vmem>>) attributes {dimension_semantics = [#tpu.dimension_semantics<parallel>, #tpu.dimension_semantics<parallel>, #tpu.dimension_semantics<arbitrary>], iteration_bounds = array<i64: 1, 2, 1>, scalar_prefetch = 0 : i64, scratch_operands = 0 : i64, tpu.core_type = #tpu.core_type<tc>, window_params = [{transform_indices = @transform_0, window_bounds = array<i64: 16, 128>}, {transform_indices = @transform_1, window_bounds = array<i64: 128, 128>}, {transform_indices = @transform_2, window_bounds = array<i64: 1, 128>}, {transform_indices = @transform_3, window_bounds = array<i64: 16, 128>}]} {
    %c0_i32 = arith.constant 0 : i32
    %0 = arith.cmpi eq, %arg2, %c0_i32 : i32
    %1 = arith.extui %0 : i1 to i32
    %c0_i32_0 = arith.constant 0 : i32
    %2 = arith.cmpi ne, %1, %c0_i32_0 : i32
    scf.if %2 {
      %c0_8 = arith.constant 0 : index
      %c0_9 = arith.constant 0 : index
      %9 = vector.load %arg5[%c0_8, %c0_9] : memref<1x128xf32, #tpu.memory_space<vmem>>, vector<1x128xf32>
      %10 = vector.shape_cast %9 : vector<1x128xf32> to vector<1x128xf32>
      %11 = vector.broadcast %10 : vector<1x128xf32> to vector<16x128xf32>
      %c0_10 = arith.constant 0 : index
      %c0_11 = arith.constant 0 : index
      %12 = vector.load %arg6[%c0_10, %c0_11] : memref<16x128xf32, #tpu.memory_space<vmem>>, vector<16x128xf32>
      tpu.vector_store %arg6[%c0_10, %c0_11], %11 {strides = array<i32>} : memref<16x128xf32, #tpu.memory_space<vmem>>, vector<16x128xf32>,
    } else {
    }
    %c0 = arith.constant 0 : index
    %c0_1 = arith.constant 0 : index
    %3 = vector.load %arg6[%c0, %c0_1] : memref<16x128xf32, #tpu.memory_space<vmem>>, vector<16x128xf32>
    %c0_2 = arith.constant 0 : index
    %c0_3 = arith.constant 0 : index
    %4 = vector.load %arg3[%c0_2, %c0_3] : memref<16x128xf32, #tpu.memory_space<vmem>>, vector<16x128xf32>
    %c0_4 = arith.constant 0 : index
    %c0_5 = arith.constant 0 : index
    %5 = vector.load %arg4[%c0_4, %c0_5] : memref<128x128xf32, #tpu.memory_space<vmem>>, vector<128x128xf32>
    %cst = arith.constant dense<0.000000e+00> : vector<16x128xf32>
    %6 = tpu.matmul %4, %5, %cst {dimension_numbers = #tpu.dot_dimension_numbers<[1], [1], [0], [0], [0, 0, 1, 0], [], []>} : vector<16x128xf32>, vector<128x128xf32>, vector<16x128xf32> -> vector<16x128xf32>
    %7 = arith.addf %3, %6 : vector<16x128xf32>
    %c0_6 = arith.constant 0 : index
    %c0_7 = arith.constant 0 : index
    %8 = vector.load %arg6[%c0_6, %c0_7] : memref<16x128xf32, #tpu.memory_space<vmem>>, vector<16x128xf32>
    tpu.vector_store %arg6[%c0_6, %c0_7], %7 {strides = array<i32>} : memref<16x128xf32, #tpu.memory_space<vmem>>, vector<16x128xf32>,
    return
  }
  func.func @transform_0(%arg0: i32, %arg1: i32, %arg2: i32) -> (i32, i32) {
    %c0_i32 = arith.constant 0 : i32
    return %arg0, %arg2 : i32, i32
  }
  func.func @transform_1(%arg0: i32, %arg1: i32, %arg2: i32) -> (i32, i32) {
    %c0_i32 = arith.constant 0 : i32
    return %arg1, %arg2 : i32, i32
  }
  func.func @transform_2(%arg0: i32, %arg1: i32, %arg2: i32) -> (i32, i32) {
    %c0_i32 = arith.constant 0 : i32
    %c0_i32_0 = arith.constant 0 : i32
    return %c0_i32, %arg1 : i32, i32
  }
  func.func @transform_3(%arg0: i32, %arg1: i32, %arg2: i32) -> (i32, i32) {
    %c0_i32 = arith.constant 0 : i32
    return %arg0, %arg1 : i32, i32
  }
}

</mosaic_0001>

<bundles_post_ra>
// kernel: _linear_forward.1
= control target key start
LH: loop header
LB: loop body
LE: loop exit
PB: predicated region body
PF: predicated region fallthrough
CT: control target
= control target key end

     0   :  { %s921_s0 = inlined_call_operand.hbm [shape: f32[16,128], index: 0, kind: input, shape index: {}]   ;;  %s922_s1 = inlined_call_operand.hbm [shape: f32[256,128], index: 1, kind: input, shape index: {}]   ;;  %s923_s2 = inlined_call_operand.vmem [shape: f32[1,256], index: 2, kind: input, shape index: {}]   ;;  %s924_s3 = inlined_call_operand.hbm [shape: f32[16,256], index: 3, kind: output, shape index: {}]  }
   0x1   :  { %926 = sst [smem:[#allocation11_spill]] %s921_s0 }
   0x2   :  { %8 = vsyncpa [#allocation3], 0 }
   0x3   :  { %9 = vsyncpa [#allocation6], 0 }
   0x4   :  { %11 = vsyncpa [#allocation6 + $0x1], 0 }
   0x5   :  { %12 = vsyncpa [#allocation4], 0 }
   0x6   :  { %14 = vsyncpa [#allocation4 + $0x1], 0  ;;  %s734_s12 = smov 0   ;;  %s736_s13 = smov 0  }
   0x7   :  { %s738_s14 = smov 0   ;;  %s740_s15 = smov 0  }
   0x8   :  { %s742_s16 = smov 0   ;;  %s744_s17 = smov 0  }
   0x9 LB: > { %s448_s18 = sadd.s32 4294967295, %s706_s17   ;;  %s449_s19 = sadd.s32 4294967294, %s706_s17   ;;  %s706_s17 = sphi %s744_s17, %s20_s17   ;;  %s702_s16 = sphi %s742_s16, %s940_s16   ;;  %s698_s15 = sphi %s740_s15, %s939_s15   ;;  %s694_s14 = sphi %s738_s14, %s938_s14   ;;  %s690_s13 = sphi %s736_s13, %s937_s13   ;;  %s686_s12 = sphi %s734_s12, %s936_s12  }
   0xa   : > { %p89_p0 = scmp.ne.s32.totalorder %s690_s13, %s686_s12  ;;  %p768_p1 = scmp.eq.s32.totalorder %s448_s18, 0 }
   0xb   : > { %p772_p2 = scmp.eq.s32.totalorder %s448_s18, 1  ;;  %p147_p3 = scmp.eq.s32.totalorder %s449_s19, 1 }
   0xc   : > { %p778_p4 = por %p768_p1, %p89_p0  ;;  %p450_p5 = scmp.ge.s32.totalorder %s706_s17, 1 }
   0xd   : > { %p783_p6 = por %p147_p3, %p89_p0  ;;  %p154_p7 = scmp.lt.s32.totalorder %s706_s17, 3 }
   0xe   : > { %s931_s0 = sld [smem:[#allocation11_spill]]  ;;  %s708_s28 = smov [#allocation2]  }
   0xf   : > { %p791_p8 = pnand %p450_p5, %p154_p7  ;;  %s171_s29 = sshll.u32 %s708_s28, 4  ;;  %s172_s29 = int_to_ptr.vmem [resolvable:$true] %s171_s29 }
  0x10   : > { %p452_p11 = scmp.ge.s32.totalorder %s706_s17, 2  ;;  %s925_s30 = smov 128  }
  0x11   : > { %p489_p9 = pneg %p791_p8  ;;  %s710_s4 = smov 8  }
  0x12   : > { %s35_s5 = sadd.s32 1, %s702_s16  ;;  %s76_s6 = sadd.s32 1, %s694_s14 }
  0x13   : > { %p490_p10 = pnand %p489_p9, %p768_p1  ;;  %p37_p12 = scmp.ge.s32.totalorder %s35_s5, 2 }
  0x14   : > { %s169_s26 = sshll.u32 %s931_s0, 4  ;;  %p83_p13 = scmp.ne.s32.totalorder %s694_s14, %s690_s13  ;;  %s170_s26 = int_to_ptr.hbm [resolvable:$true] %s169_s26 }
  0x15   : > { %492 = dma.hbm_to_vmem [thread:$0]  (!%p490_p10), %s170_s26, 256, %s172_s29, [#allocation3], %s925_s30, %s925_s30, %s710_s4  }
  0x16   : > { %p84_p0 = scmp.eq.s32.totalorder %s706_s17, 0  ;;  %s942_s5 = smov (%p37_p12, %s35_s5), 0 }
  0x17   : > { %p816_p5 = por %p772_p2, %p83_p13  ;;  %s71_s9 = ssub.s32 %s702_s16, %s942_s5 }
  0x18   : > { %p810_p3 = por %p84_p0, %p83_p13  ;;  %p502_p7 = scmp.lt.s32.totalorder %s706_s17, 2 }
  0x19   : > { %p74_p9 = scmp.eq.s32.totalorder %s71_s9, 0  ;;  %s185_s10 = sand.u32 1, %s694_s14  }
  0x1a   : > { %s453_s11 = sshll.u32 %s185_s10, 7  ;;  %s464_s19 = sshll.u32 %s702_s16, 7 }
  0x1b   : > { %s825_s18 = scalar_select %p74_p9, %s694_s14, %s76_s6  }
  0x1c   : > { %s195_s26 = scalar_lea.hbm %s922_s1, %s464_s19  ;;  %s189_s28 = scalar_lea.vmem [#allocation5], %s453_s11 }
  0x1d   : > { %s198_s29 = sshll.u32 %s189_s28, 4  ;;  %s196_s21 = sshll.u32 %s195_s26, 4  ;;  %s199_s29 = int_to_ptr.vmem [resolvable:$true] %s198_s29  ;;  %s197_s21 = int_to_ptr.hbm [resolvable:$true] %s196_s21 }
  0x1e   : > { %p494_p2 = pnand %p502_p7, %p810_p3  ;;  %s186_s30 = scalar_lea.sflag [#allocation6], %s185_s10 }
  0x1f   : > { %s935_s0 = smov 128   ;;  %216 = sbr.rel (%p791_p8) target bundleno = 239 (0xef), region = 32 }
  0x20   : > { %496 = dma.hbm_to_vmem [thread:$0]  (!%p494_p2), %s197_s21, 2048, %s199_s29, %s186_s30, %s935_s0, %s935_s0, %s710_s4  }
  0x24   : > { %673 = dma.done.wait (%p768_p1), [#allocation3], 256  }
  0x25   : > { %675 = vsyncadd (%p768_p1), [#allocation3], 4294967040  ;;  %s843_s6 = sand.u32 1, %s690_s13  }
  0x26   : > { %s458_s7 = sshll.u32 %s843_s6, 7  ;;  %s224_s9 = scalar_lea.sflag [#allocation6], %s843_s6 }
  0x27   : > { %s847_s10 = scalar_lea.vmem [#allocation5], %s458_s7 }
  0x28   : > { %677 = dma.done.wait (%p778_p4), %s224_s9, 2048  }
  0x29   : > { %679 = vsyncadd (%p778_p4), %s224_s9, 4294965248  ;;  %p256_p1 = scmp.lt.s32.totalorder %s698_s15, 1  ;;  %v289_v0 = vld [vmem:[%s847_s10 + $0x78] sm:$0xff]  ;;  %v288_v1 = vld [vmem:[%s847_s10 + $0x70] sm:$0xff]  ;;  %s459_s30 = sshll.u32 %s843_s6, 4 }
  0x2a   : > { %290 = vmatpush.xpose.msra.mxu0 %v289_v0  ;;  %465 = vmatpush.xpose.msra.mxu1 %v289_v0  ;;  %v287_v2 = vld [vmem:[%s847_s10 + $0x68] sm:$0xff]  ;;  %v286_v3 = vld [vmem:[%s847_s10 + $0x60] sm:$0xff]  ;;  %v285_v4 = vld [vmem:[%s847_s10 + $0x58] sm:$0xff]  ;;  %s461_s4 = sshll.u32 %s698_s15, 3  ;;  %s253_s28 = scalar_lea.vmem [#allocation7], %s459_s30 }
  0x2b   : > { %s855_s0 = scalar_select %p256_p1, %s698_s15, 1  ;;  %v284_v5 = vld [vmem:[%s847_s10 + $0x50] sm:$0xff]  ;;  %v283_v6 = vld [vmem:[%s847_s10 + $0x48] sm:$0xff]  ;;  %v282_v7 = vld [vmem:[%s847_s10 + $0x40] sm:$0xff] }
  0x2c   : > { %v281_v8 = vld [vmem:[%s847_s10 + $0x38] sm:$0xff]  ;;  %v280_v9 = vld [vmem:[%s847_s10 + $0x30] sm:$0xff]  ;;  %v279_v10 = vld [vmem:[%s847_s10 + $0x28] sm:$0xff]  ;;  %s331_s24 = scalar_lea.hbm %s924_s3, %s461_s4  ;;  %s332_s29 = sshll.u32 %s253_s28, 4  ;;  %s333_s29 = int_to_ptr.vmem [resolvable:$true] %s332_s29 }
  0x2d   : > { %s258_s22 = scalar_lea.vmem %s923_s2, %s855_s0  ;;  %v278_v11 = vld [vmem:[%s847_s10 + $0x20] sm:$0xff]  ;;  %v277_v12 = vld [vmem:[%s847_s10 + $0x18] sm:$0xff]  ;;  %v276_v13 = vld [vmem:[%s847_s10 + $0x10] sm:$0xff]  ;;  %s334_s21 = sshll.u32 %s331_s24, 4  ;;  %s335_s21 = int_to_ptr.hbm [resolvable:$true] %s334_s21 }
  0x2e   : > { %291 = vmatpush.xpose.msra.mxu0 %v288_v1  ;;  %466 = vmatpush.xpose.msra.mxu1 %v288_v1  ;;  %v275_v14 = vld [vmem:[%s847_s10 + $0x8] sm:$0xff]  ;;  %v274_v15 = vld [vmem:[%s847_s10] sm:$0xff]  ;;  %v272_v16 = vld [vmem:[#allocation2] sm:$0xff]  ;;  %s318_s15 = scalar_lea.sflag [#allocation4], %s843_s6  ;;  %s634_s7 = sshra.s32 %s335_s21, 4  ;;  %s635_s7 = int_to_ptr.hbm [resolvable:$true] %s634_s7 }
  0x2f   : > { %v273_v17 = vld [vmem:[#allocation2 + $0x8] sm:$0xff]  ;;  %v559_v18 = vld [vmem:[%s258_s22] ss:$0 sm:$0xff]  ;;  %s636_s9 = scalar_lea.hbm %s635_s7, 16  ;;  %s640_s20 = scalar_lea.hbm %s924_s3, 32 }
  0x30   : > { %p637_p4 = scmp.ne.s32.totalorder %s635_s7, %s636_s9  ;;  %p641_p12 = scmp.lt.s32.totalorder %s635_s7, %s924_s3 }
  0x31   : > { %p642_p13 = scmp.lt.s32.totalorder %s640_s20, %s636_s9 }
  0x32   : > { %292 = vmatpush.xpose.msra.mxu0 %v287_v2  ;;  %467 = vmatpush.xpose.msra.mxu1 %v287_v2  ;;  %p638_p8 = pnand %p637_p4, %p816_p5 }
  0x33   : > { %p643_p0 = por %p642_p13, %p641_p12 }
  0x34   : > { %p639_p10 = pneg %p638_p8 }
  0x36   : > { %293 = vmatpush.xpose.msra.mxu0 %v286_v3  ;;  %468 = vmatpush.xpose.msra.mxu1 %v286_v3  ;;  %p644_p3 = pnand %p643_p0, %p639_p10 }
  0x3a   : > { %294 = vmatpush.xpose.msra.mxu0 %v285_v4  ;;  %469 = vmatpush.xpose.msra.mxu1 %v285_v4 }
  0x3e   : > { %295 = vmatpush.xpose.msra.mxu0 %v284_v5  ;;  %470 = vmatpush.xpose.msra.mxu1 %v284_v5 }
  0x42   : > { %296 = vmatpush.xpose.msra.mxu0 %v283_v6  ;;  %471 = vmatpush.xpose.msra.mxu1 %v283_v6 }
  0x46   : > { %297 = vmatpush.xpose.msra.mxu0 %v282_v7  ;;  %472 = vmatpush.xpose.msra.mxu1 %v282_v7 }
  0x4a   : > { %298 = vmatpush.xpose.msra.mxu0 %v281_v8  ;;  %473 = vmatpush.xpose.msra.mxu1 %v281_v8 }
  0x4e   : > { %299 = vmatpush.xpose.msra.mxu0 %v280_v9  ;;  %474 = vmatpush.xpose.msra.mxu1 %v280_v9 }
  0x52   : > { %300 = vmatpush.xpose.msra.mxu0 %v279_v10  ;;  %475 = vmatpush.xpose.msra.mxu1 %v279_v10 }
  0x56   : > { %301 = vmatpush.xpose.msra.mxu0 %v278_v11  ;;  %476 = vmatpush.xpose.msra.mxu1 %v278_v11 }
  0x5a   : > { %302 = vmatpush.xpose.msra.mxu0 %v277_v12  ;;  %477 = vmatpush.xpose.msra.mxu1 %v277_v12 }
  0x5e   : > { %303 = vmatpush.xpose.msra.mxu0 %v276_v13  ;;  %478 = vmatpush.xpose.msra.mxu1 %v276_v13 }
  0x62   : > { %304 = vmatpush.xpose.msra.mxu0 %v275_v14  ;;  %479 = vmatpush.xpose.msra.mxu1 %v275_v14 }
  0x66   : > { %305 = vmatpush.xpose.msra.mxu0 %v274_v15  ;;  %480 = vmatpush.xpose.msra.mxu1 %v274_v15 }
  0x69   : > { %306 = vmatmul.f32.vlgmr.msra.gmra.mxu0 %v272_v16  ;;  %309 = vmatmul.f32.vlgmr.msra.gmra.mxu1 %v273_v17 }
  0xe6   : > { %v307_v19 = vpop.f32.mrf.mxu0  ;;  %v310_v20 = vpop.f32.mrf.mxu1 }
  0xe7   : > { %v313_v21 = vadd.f32 %v559_v18, %v307_v19  ;;  %v314_v22 = vadd.f32 %v559_v18, %v310_v20 }
  0xe9   : > { %315 = vst [vmem:[%s253_s28] sm:$0xff] %v313_v21 }
  0xea   : > { %316 = vst [vmem:[%s253_s28 + $0x8] sm:$0xff] %v314_v22 }
  0xeb   : > { %647 = shalt.err (!%p644_p3)
}
  0xec   : > { %s711_s6 = smov 128   ;;  %s712_s30 = smov 256  }
  0xed   : > { %s713_s4 = smov 8  }
  0xee   : > { %487 = dma.vmem_to_hbm [thread:$0]  (%p816_p5), %s333_s29, 256, %s335_s21, %s318_s15, %s711_s6, %s712_s30, %s713_s4  }
  0xef PF: > { %s349_s11 = sand.u32 1, %s686_s12   ;;  %p498_p7 = pnand %p452_p11, %p783_p6 }
  0xf0   : > { %s350_s19 = scalar_lea.sflag [#allocation4], %s349_s11 }
  0xf1   : > { %p499_p9 = pneg %p498_p7 }
  0xf3   : > { %681 = dma.done.wait (%p499_p9), %s350_s19, 256  }
  0xf4   : > { %683 = vsyncadd (%p499_p9), %s350_s19, 4294967040  ;;  %s20_s17 = sadd.s32 1, %s706_s17   ;;  %s936_s12 = smov %s690_s13 }
  0xf5   : > { %p17_p2 = scmp.ge.s32.totalorder %s20_s17, 4   ;;  %s937_s13 = smov %s694_s14 }
  0xf6   : > { %s938_s14 = smov %s825_s18  ;;  %s939_s15 = smov %s702_s16 }
  0xf7   : > { %s940_s16 = smov %s942_s5  ;;  %19 = sbr.rel (!%p17_p2) target bundleno = 9 (0x9), region = 90 }
  0xfc   :  { %356 = vsyncpa [#allocation3], 1 }
  0xfd   :  { %358 = vsyncpa [#allocation3 + $0x1], 1 }
  0xfe   :  { %359 = vsyncpa [#allocation6], 1 }
  0xff   :  { %361 = vsyncpa [#allocation6 + $0x1], 1 }
 0x100   :  { %362 = vsyncpa [#allocation4], 1 }
 0x101   :  { %364 = vsyncpa [#allocation4 + $0x1], 1 }

</bundles_post_ra>
